<compile_context>
chip_gen: v7x
topology: tpu7x:2x2x1
jax: 0.10.0
libtpu: 0.0.40
codegen_flags: <defaults>
</compile_context>

<pallas_src>
import numpy as np
import jax
import jax.numpy as jnp
from jax.experimental import pallas as pl
from jax.experimental.pallas import tpu as pltpu

# ---------------- problem sizes (small, consistent with the module) ----------
B = 2            # batch
D_MODEL = 32     # channels / d_model
D_QKV = 8        # per-head dim
N_HEADS = D_MODEL // D_QKV
SEQ = 16         # sequence length N
EPS = 1e-5

ROWS = B * SEQ                 # token rows in token-major layout (32)
R_FOLD = N_HEADS * ROWS        # rows after folding heads into rows (128)


# ---------------------------------------------------------------------------
# Single fused kernel (token-major in / token-major out):
#   LN stats -> fused per-head-interleaved QKV -> fold heads -> block-diag
#   masked attention -> residual + head-distributed 1x1 conv -> BatchNorm
#   (batch stats) -> ReLU.
# ---------------------------------------------------------------------------
def fused_attention_kernel(x_ref, wqkv_ref, wc_ref, vec_ref, mask_ref, out_ref):
    xf = x_ref[...]                                    # (B*N, C), rows (b, n)

    # ---- LayerNorm statistics (affine folded into wqkv/bqkv in the wrapper)
    mu = jnp.mean(xf, axis=-1, keepdims=True)
    var = jnp.mean((xf - mu) ** 2, axis=-1, keepdims=True)
    z = (xf - mu) * jax.lax.rsqrt(var + EPS)           # (B*N, C)

    # ---- fused QKV projection, columns interleaved per head ----------------
    qkv = (jnp.dot(z, wqkv_ref[...], preferred_element_type=jnp.float32)
           + vec_ref[0:1, :])                          # (B*N, 3C)

    # ---- fold (head, batch, token) into rows: (H*B*N, 3*Dh) -----------------
    blk = 3 * D_QKV
    folded = jnp.concatenate(
        [qkv[:, h * blk:(h + 1) * blk] for h in range(N_HEADS)], axis=0)
    q_f = folded[:, 0:D_QKV]                           # (128, 8)
    k_f = folded[:, D_QKV:2 * D_QKV]
    v_f = folded[:, 2 * D_QKV:3 * D_QKV]

    # ---- one block-diagonal masked attention over all (batch, head) blocks --
    s = jax.lax.dot_general(q_f, k_f, (((1,), (1,)), ((), ())),
                            preferred_element_type=jnp.float32)       # (R, R)
    s = s * (1.0 / np.sqrt(D_QKV)) + mask_ref[...]
    s = s - jnp.max(s, axis=-1, keepdims=True)
    p = jnp.exp(s)
    p = p * pl.reciprocal(jnp.sum(p, axis=-1, keepdims=True), approx=True)
    o_f = jnp.dot(p, v_f, preferred_element_type=jnp.float32)         # (R, Dh)

    # ---- residual + 1x1 conv distributed over heads (no unfold) -------------
    # Conv bias is dropped: training-mode BatchNorm cancels per-channel consts.
    zc = jnp.dot(xf, wc_ref[...], preferred_element_type=jnp.float32)
    for h in range(N_HEADS):
        zc = zc + jnp.dot(o_f[h * ROWS:(h + 1) * ROWS, :],
                          wc_ref[h * D_QKV:(h + 1) * D_QKV, :],
                          preferred_element_type=jnp.float32)

    # ---- BatchNorm1d (training-mode batch stats over all B*N rows) + ReLU ---
    bmu = jnp.mean(zc, axis=0, keepdims=True)
    bvar = jnp.mean((zc - bmu) ** 2, axis=0, keepdims=True)
    y = ((zc - bmu) * jax.lax.rsqrt(bvar + EPS)
         * vec_ref[1:2, 0:D_MODEL] + vec_ref[2:3, 0:D_MODEL])
    out_ref[...] = jnp.maximum(y, 0.0)                 # (B*N, C), lane-dense


# ---------------------------------------------------------------------------
# One-time parameter re-layout (outside the hot path)
# ---------------------------------------------------------------------------
def prepare_params(p):
    """Fold LN affine into QKV, interleave QKV per head, pack small vectors,
    precompute the block-diagonal softmax mask, drop the (BN-cancelled) conv
    bias."""
    C, Dh, H = D_MODEL, D_QKV, N_HEADS
    g = p["ln_g"].reshape(C, 1)          # LN gamma, row-scale for W^T
    bln = p["ln_b"].reshape(1, C)        # LN beta, folds into the bias

    def fold_linear(w, bias):            # PyTorch Linear: y = x @ W^T + b
        wt = w.T                         # (C_in, C_out)
        return g * wt, bias.reshape(1, C) + bln @ wt

    wq_t, bq = fold_linear(p["wq"], p["bq"])
    wk_t, bk = fold_linear(p["wk"], p["bk"])
    wv_t, bv = fold_linear(p["wv"], p["bv"])

    # Interleave columns per head: [q_h | k_h | v_h] blocks of 3*Dh.
    w_cols, b_cols = [], []
    for h in range(H):
        sl = slice(h * Dh, (h + 1) * Dh)
        w_cols += [wq_t[:, sl], wk_t[:, sl], wv_t[:, sl]]
        b_cols += [bq[:, sl], bk[:, sl], bv[:, sl]]
    wqkv = jnp.concatenate(w_cols, axis=1)             # (C, 3C)
    bqkv = jnp.concatenate(b_cols, axis=1)             # (1, 3C)

    # Pack all small per-channel vectors into ONE slab -> one DMA.
    vec = jnp.zeros((8, 3 * C), jnp.float32)
    vec = vec.at[0, :].set(bqkv[0])                    # fused QKV bias
    vec = vec.at[1, :C].set(p["bn_g"].reshape(C))      # BN gamma
    vec = vec.at[2, :C].set(p["bn_b"].reshape(C))      # BN beta

    # Block-diagonal additive mask for the folded (128,128) softmax.
    blk = np.arange(R_FOLD) // SEQ
    mask = np.where(blk[:, None] == blk[None, :], 0.0, -1e30).astype(np.float32)

    return {
        "wqkv": wqkv,
        "wc_t": p["wc"].T,               # 1x1 conv weight, pre-transposed
        "vec": vec,
        "mask": jnp.asarray(mask),
    }


# ---------------------------------------------------------------------------
# Wrapper: NCL <-> token-major relayout stays in XLA (fuses with neighbours)
# ---------------------------------------------------------------------------
@jax.jit
def attention_forward(x_ncl, prepared):
    """x_ncl: (B, d_model, N) float32 -> (B, d_model, N) float32."""
    Bx, C, N = x_ncl.shape
    xt = jnp.transpose(x_ncl, (0, 2, 1)).reshape(Bx * N, C)   # token-major

    vspec = pl.BlockSpec(memory_space=pltpu.MemorySpace.VMEM)
    y = pl.pallas_call(
        fused_attention_kernel,
        out_shape=jax.ShapeDtypeStruct((Bx * N, C), jnp.float32),
        in_specs=[vspec] * 5,
        out_specs=vspec,
    )(xt, prepared["wqkv"], prepared["wc_t"], prepared["vec"], prepared["mask"])

    return jnp.transpose(y.reshape(Bx, N, C), (0, 2, 1))


# ---------------------------------------------------------------------------
# Pure-JAX reference (mirrors the PyTorch module exactly) for a self-check
# ---------------------------------------------------------------------------
def reference_forward(x_ncl, p):
    Bx, C, N = x_ncl.shape
    xt = jnp.transpose(x_ncl, (0, 2, 1))
    mu = xt.mean(-1, keepdims=True)
    var = ((xt - mu) ** 2).mean(-1, keepdims=True)
    ln = (xt - mu) / jnp.sqrt(var + EPS) * p["ln_g"] + p["ln_b"]
    q = (ln @ p["wq"].T + p["bq"]).reshape(Bx, N, N_HEADS, D_QKV)
    k = (ln @ p["wk"].T + p["bk"]).reshape(Bx, N, N_HEADS, D_QKV)
    v = (ln @ p["wv"].T + p["bv"]).reshape(Bx, N, N_HEADS, D_QKV)
    s = jnp.einsum("bnhd,bmhd->bhnm", q, k) / np.sqrt(D_QKV)
    a = jax.nn.softmax(s, axis=-1)
    o = jnp.einsum("bhnm,bmhd->bnhd", a, v).reshape(Bx, N, C)
    r = xt + o
    z = r @ p["wc"].T + p["bc"]
    m = z.mean((0, 1), keepdims=True)
    vv = ((z - m) ** 2).mean((0, 1), keepdims=True)
    y = (z - m) / jnp.sqrt(vv + EPS) * p["bn_g"] + p["bn_b"]
    y = jnp.maximum(y, 0.0)
    return jnp.transpose(y, (0, 2, 1))


# ---------------------------------------------------------------------------
if __name__ == "__main__":
    key = jax.random.PRNGKey(0)
    keys = jax.random.split(key, 13)

    def rand(k, shape, scale=0.1):
        return (scale * jax.random.normal(k, shape)).astype(jnp.float32)

    # Deterministic synthetic parameters (shapes follow the nn.Module __init__).
    params = {
        "ln_g": 1.0 + rand(keys[0], (1, D_MODEL)),
        "ln_b": rand(keys[1], (1, D_MODEL)),
        "wq": rand(keys[2], (D_MODEL, D_MODEL)),
        "bq": rand(keys[3], (1, D_MODEL)),
        "wk": rand(keys[4], (D_MODEL, D_MODEL)),
        "bk": rand(keys[5], (1, D_MODEL)),
        "wv": rand(keys[6], (D_MODEL, D_MODEL)),
        "bv": rand(keys[7], (1, D_MODEL)),
        # Conv1d(k=1) weight (C_out, C_in, 1) stored as (C_out, C_in).
        "wc": rand(keys[8], (D_MODEL, D_MODEL)),
        "bc": rand(keys[9], (1, D_MODEL)),
        "bn_g": 1.0 + rand(keys[10], (1, D_MODEL)),
        "bn_b": rand(keys[11], (1, D_MODEL)),
    }
    x = jax.random.normal(keys[12], (B, D_MODEL, SEQ), dtype=jnp.float32)

    prepared = prepare_params(params)
    out = attention_forward(x, prepared)
    out = jax.block_until_ready(out)

    ref = reference_forward(x, params)
    assert out.shape == (B, D_MODEL, SEQ)
    # Tolerance accounts for the approximate (EUP) softmax reciprocal and the
    # LN-affine / conv-bias refactorings (pure reassociation, f32 throughout).
    np.testing.assert_allclose(np.asarray(out), np.asarray(ref),
                               rtol=2e-3, atol=2e-3)

    # TODO(synk): BatchNorm1d running_mean/running_var buffer updates (stateful
    # training side effect) are not materialized; the forward output does not
    # depend on them.

    print("KERNEL_OK")
</pallas_src>

<mosaic_0001>
module attributes {stable_mosaic.version = 11 : i64} {
  func.func @fused_attention_kernel(%arg0: memref<32x32xf32, #tpu.memory_space<vmem>>, %arg1: memref<32x96xf32, #tpu.memory_space<vmem>>, %arg2: memref<32x32xf32, #tpu.memory_space<vmem>>, %arg3: memref<8x96xf32, #tpu.memory_space<vmem>>, %arg4: memref<128x128xf32, #tpu.memory_space<vmem>>, %arg5: memref<32x32xf32, #tpu.memory_space<vmem>>) attributes {dimension_semantics = [], scalar_prefetch = 0 : i64, scratch_operands = 0 : i64, tpu.core_type = #tpu.core_type<tc>} {
    %c0 = arith.constant 0 : index
    %c0_0 = arith.constant 0 : index
    %0 = vector.load %arg0[%c0, %c0_0] : memref<32x32xf32, #tpu.memory_space<vmem>>, vector<32x32xf32>
    %cst = arith.constant dense<0.000000e+00> : vector<32xf32>
    %1 = vector.multi_reduction <add>, %0, %cst [1] : vector<32x32xf32> to vector<32xf32>
    %2 = vector.shape_cast %1 : vector<32xf32> to vector<32x1xf32>
    %cst_1 = arith.constant 3.200000e+01 : f32
    %3 = vector.broadcast %cst_1 : f32 to vector<32x1xf32>
    %4 = arith.divf %2, %3 : vector<32x1xf32>
    %5 = vector.broadcast %4 : vector<32x1xf32> to vector<32x32xf32>
    %6 = arith.subf %0, %5 : vector<32x32xf32>
    %7 = arith.mulf %6, %6 : vector<32x32xf32>
    %cst_2 = arith.constant dense<0.000000e+00> : vector<32xf32>
    %8 = vector.multi_reduction <add>, %7, %cst_2 [1] : vector<32x32xf32> to vector<32xf32>
    %9 = vector.shape_cast %8 : vector<32xf32> to vector<32x1xf32>
    %cst_3 = arith.constant 3.200000e+01 : f32
    %10 = vector.broadcast %cst_3 : f32 to vector<32x1xf32>
    %11 = arith.divf %9, %10 : vector<32x1xf32>
    %12 = vector.broadcast %4 : vector<32x1xf32> to vector<32x32xf32>
    %13 = arith.subf %0, %12 : vector<32x32xf32>
    %cst_4 = arith.constant 9.99999974E-6 : f32
    %14 = vector.broadcast %cst_4 : f32 to vector<32x1xf32>
    %15 = arith.addf %11, %14 : vector<32x1xf32>
    %16 = math.rsqrt %15 : vector<32x1xf32>
    %17 = vector.broadcast %16 : vector<32x1xf32> to vector<32x32xf32>
    %18 = arith.mulf %13, %17 : vector<32x32xf32>
    %c0_5 = arith.constant 0 : index
    %c0_6 = arith.constant 0 : index
    %19 = vector.load %arg1[%c0_5, %c0_6] : memref<32x96xf32, #tpu.memory_space<vmem>>, vector<32x96xf32>
    %cst_7 = arith.constant dense<0.000000e+00> : vector<32x96xf32>
    %20 = tpu.matmul %18, %19, %cst_7 {dimension_numbers = #tpu.dot_dimension_numbers<[1], [0], [0], [1], [0, 0, 1, 1], [], []>} : vector<32x32xf32>, vector<32x96xf32>, vector<32x96xf32> -> vector<32x96xf32>
    %c0_8 = arith.constant 0 : index
    %c0_9 = arith.constant 0 : index
    %21 = vector.load %arg3[%c0_8, %c0_9] : memref<8x96xf32, #tpu.memory_space<vmem>>, vector<1x96xf32>
    %22 = vector.broadcast %21 : vector<1x96xf32> to vector<32x96xf32>
    %23 = arith.addf %20, %22 : vector<32x96xf32>
    %24 = vector.extract_strided_slice %23 {offsets = [0, 0], sizes = [32, 24], strides = [1, 1]} : vector<32x96xf32> to vector<32x24xf32>
    %25 = vector.extract_strided_slice %23 {offsets = [0, 24], sizes = [32, 24], strides = [1, 1]} : vector<32x96xf32> to vector<32x24xf32>
    %26 = vector.extract_strided_slice %23 {offsets = [0, 48], sizes = [32, 24], strides = [1, 1]} : vector<32x96xf32> to vector<32x24xf32>
    %27 = vector.extract_strided_slice %23 {offsets = [0, 72], sizes = [32, 24], strides = [1, 1]} : vector<32x96xf32> to vector<32x24xf32>
    %28 = tpu.concatenate %24, %25, %26, %27 in 0 : vector<32x24xf32>, vector<32x24xf32>, vector<32x24xf32>, vector<32x24xf32> -> vector<128x24xf32>
    %29 = vector.extract_strided_slice %28 {offsets = [0, 0], sizes = [128, 8], strides = [1, 1]} : vector<128x24xf32> to vector<128x8xf32>
    %30 = vector.extract_strided_slice %28 {offsets = [0, 8], sizes = [128, 8], strides = [1, 1]} : vector<128x24xf32> to vector<128x8xf32>
    %31 = vector.extract_strided_slice %28 {offsets = [0, 16], sizes = [128, 8], strides = [1, 1]} : vector<128x24xf32> to vector<128x8xf32>
    %cst_10 = arith.constant dense<0.000000e+00> : vector<128x128xf32>
    %32 = tpu.matmul %29, %30, %cst_10 {dimension_numbers = #tpu.dot_dimension_numbers<[1], [1], [0], [0], [0, 0, 1, 0], [], []>} : vector<128x8xf32>, vector<128x8xf32>, vector<128x128xf32> -> vector<128x128xf32>
    %cst_11 = arith.constant 0.353553385 : f32
    %33 = vector.broadcast %cst_11 : f32 to vector<128x128xf32>
    %34 = arith.mulf %32, %33 : vector<128x128xf32>
    %c0_12 = arith.constant 0 : index
    %c0_13 = arith.constant 0 : index
    %35 = vector.load %arg4[%c0_12, %c0_13] : memref<128x128xf32, #tpu.memory_space<vmem>>, vector<128x128xf32>
    %36 = arith.addf %34, %35 : vector<128x128xf32>
    %cst_14 = arith.constant dense<0xFF800000> : vector<128xf32>
    %37 = vector.multi_reduction <maximumf>, %36, %cst_14 [1] : vector<128x128xf32> to vector<128xf32>
    %38 = vector.shape_cast %37 : vector<128xf32> to vector<128x1xf32>
    %39 = vector.broadcast %38 : vector<128x1xf32> to vector<128x128xf32>
    %40 = arith.subf %36, %39 : vector<128x128xf32>
    %41 = math.exp %40 : vector<128x128xf32>
    %cst_15 = arith.constant dense<0.000000e+00> : vector<128xf32>
    %42 = vector.multi_reduction <add>, %41, %cst_15 [1] : vector<128x128xf32> to vector<128xf32>
    %43 = vector.shape_cast %42 : vector<128xf32> to vector<128x1xf32>
    %44 = tpu.reciprocal %43 {approx = true} : vector<128x1xf32> -> vector<128x1xf32>
    %45 = vector.broadcast %44 : vector<128x1xf32> to vector<128x128xf32>
    %46 = arith.mulf %41, %45 : vector<128x128xf32>
    %cst_16 = arith.constant dense<0.000000e+00> : vector<128x8xf32>
    %47 = tpu.matmul %46, %31, %cst_16 {dimension_numbers = #tpu.dot_dimension_numbers<[1], [0], [0], [1], [0, 0, 1, 1], [], []>} : vector<128x128xf32>, vector<128x8xf32>, vector<128x8xf32> -> vector<128x8xf32>
    %c0_17 = arith.constant 0 : index
    %c0_18 = arith.constant 0 : index
    %48 = vector.load %arg2[%c0_17, %c0_18] : memref<32x32xf32, #tpu.memory_space<vmem>>, vector<32x32xf32>
    %cst_19 = arith.constant dense<0.000000e+00> : vector<32x32xf32>
    %49 = tpu.matmul %0, %48, %cst_19 {dimension_numbers = #tpu.dot_dimension_numbers<[1], [0], [0], [1], [0, 0, 1, 1], [], []>} : vector<32x32xf32>, vector<32x32xf32>, vector<32x32xf32> -> vector<32x32xf32>
    %50 = vector.extract_strided_slice %47 {offsets = [0, 0], sizes = [32, 8], strides = [1, 1]} : vector<128x8xf32> to vector<32x8xf32>
    %c0_20 = arith.constant 0 : index
    %c0_21 = arith.constant 0 : index
    %51 = vector.load %arg2[%c0_20, %c0_21] : memref<32x32xf32, #tpu.memory_space<vmem>>, vector<8x32xf32>
    %cst_22 = arith.constant dense<0.000000e+00> : vector<32x32xf32>
    %52 = tpu.matmul %50, %51, %cst_22 {dimension_numbers = #tpu.dot_dimension_numbers<[1], [0], [0], [1], [0, 0, 1, 1], [], []>} : vector<32x8xf32>, vector<8x32xf32>, vector<32x32xf32> -> vector<32x32xf32>
    %53 = arith.addf %49, %52 : vector<32x32xf32>
    %54 = vector.extract_strided_slice %47 {offsets = [32, 0], sizes = [32, 8], strides = [1, 1]} : vector<128x8xf32> to vector<32x8xf32>
    %c8 = arith.constant 8 : index
    %c0_23 = arith.constant 0 : index
    %55 = vector.load %arg2[%c8, %c0_23] : memref<32x32xf32, #tpu.memory_space<vmem>>, vector<8x32xf32>
    %cst_24 = arith.constant dense<0.000000e+00> : vector<32x32xf32>
    %56 = tpu.matmul %54, %55, %cst_24 {dimension_numbers = #tpu.dot_dimension_numbers<[1], [0], [0], [1], [0, 0, 1, 1], [], []>} : vector<32x8xf32>, vector<8x32xf32>, vector<32x32xf32> -> vector<32x32xf32>
    %57 = arith.addf %53, %56 : vector<32x32xf32>
    %58 = vector.extract_strided_slice %47 {offsets = [64, 0], sizes = [32, 8], strides = [1, 1]} : vector<128x8xf32> to vector<32x8xf32>
    %c16 = arith.constant 16 : index
    %c0_25 = arith.constant 0 : index
    %59 = vector.load %arg2[%c16, %c0_25] : memref<32x32xf32, #tpu.memory_space<vmem>>, vector<8x32xf32>
    %cst_26 = arith.constant dense<0.000000e+00> : vector<32x32xf32>
    %60 = tpu.matmul %58, %59, %cst_26 {dimension_numbers = #tpu.dot_dimension_numbers<[1], [0], [0], [1], [0, 0, 1, 1], [], []>} : vector<32x8xf32>, vector<8x32xf32>, vector<32x32xf32> -> vector<32x32xf32>
    %61 = arith.addf %57, %60 : vector<32x32xf32>
    %62 = vector.extract_strided_slice %47 {offsets = [96, 0], sizes = [32, 8], strides = [1, 1]} : vector<128x8xf32> to vector<32x8xf32>
    %c24 = arith.constant 24 : index
    %c0_27 = arith.constant 0 : index
    %63 = vector.load %arg2[%c24, %c0_27] : memref<32x32xf32, #tpu.memory_space<vmem>>, vector<8x32xf32>
    %cst_28 = arith.constant dense<0.000000e+00> : vector<32x32xf32>
    %64 = tpu.matmul %62, %63, %cst_28 {dimension_numbers = #tpu.dot_dimension_numbers<[1], [0], [0], [1], [0, 0, 1, 1], [], []>} : vector<32x8xf32>, vector<8x32xf32>, vector<32x32xf32> -> vector<32x32xf32>
    %65 = arith.addf %61, %64 : vector<32x32xf32>
    %cst_29 = arith.constant dense<0.000000e+00> : vector<32xf32>
    %66 = vector.multi_reduction <add>, %65, %cst_29 [0] : vector<32x32xf32> to vector<32xf32>
    %67 = vector.shape_cast %66 : vector<32xf32> to vector<1x32xf32>
    %cst_30 = arith.constant 3.200000e+01 : f32
    %68 = vector.broadcast %cst_30 : f32 to vector<1x32xf32>
    %69 = arith.divf %67, %68 : vector<1x32xf32>
    %70 = vector.broadcast %69 : vector<1x32xf32> to vector<32x32xf32>
    %71 = arith.subf %65, %70 : vector<32x32xf32>
    %72 = arith.mulf %71, %71 : vector<32x32xf32>
    %cst_31 = arith.constant dense<0.000000e+00> : vector<32xf32>
    %73 = vector.multi_reduction <add>, %72, %cst_31 [0] : vector<32x32xf32> to vector<32xf32>
    %74 = vector.shape_cast %73 : vector<32xf32> to vector<1x32xf32>
    %cst_32 = arith.constant 3.200000e+01 : f32
    %75 = vector.broadcast %cst_32 : f32 to vector<1x32xf32>
    %76 = arith.divf %74, %75 : vector<1x32xf32>
    %77 = vector.broadcast %69 : vector<1x32xf32> to vector<32x32xf32>
    %78 = arith.subf %65, %77 : vector<32x32xf32>
    %cst_33 = arith.constant 9.99999974E-6 : f32
    %79 = vector.broadcast %cst_33 : f32 to vector<1x32xf32>
    %80 = arith.addf %76, %79 : vector<1x32xf32>
    %81 = math.rsqrt %80 : vector<1x32xf32>
    %82 = vector.broadcast %81 : vector<1x32xf32> to vector<32x32xf32>
    %83 = arith.mulf %78, %82 : vector<32x32xf32>
    %c1 = arith.constant 1 : index
    %c0_34 = arith.constant 0 : index
    %84 = vector.load %arg3[%c1, %c0_34] : memref<8x96xf32, #tpu.memory_space<vmem>>, vector<1x32xf32>
    %85 = vector.broadcast %84 : vector<1x32xf32> to vector<32x32xf32>
    %86 = arith.mulf %83, %85 : vector<32x32xf32>
    %c2 = arith.constant 2 : index
    %c0_35 = arith.constant 0 : index
    %87 = vector.load %arg3[%c2, %c0_35] : memref<8x96xf32, #tpu.memory_space<vmem>>, vector<1x32xf32>
    %88 = vector.broadcast %87 : vector<1x32xf32> to vector<32x32xf32>
    %89 = arith.addf %86, %88 : vector<32x32xf32>
    %cst_36 = arith.constant 0.000000e+00 : f32
    %90 = vector.broadcast %cst_36 : f32 to vector<32x32xf32>
    %91 = arith.maximumf %89, %90 : vector<32x32xf32>
    %c0_37 = arith.constant 0 : index
    %c0_38 = arith.constant 0 : index
    %92 = vector.load %arg5[%c0_37, %c0_38] : memref<32x32xf32, #tpu.memory_space<vmem>>, vector<32x32xf32>
    tpu.vector_store %arg5[%c0_37, %c0_38], %91 {strides = array<i32>} : memref<32x32xf32, #tpu.memory_space<vmem>>, vector<32x32xf32>,
    return
  }
}

</mosaic_0001>

<bundles_post_ra>
// kernel: attention_forward.1
= control target key start
LH: loop header
LB: loop body
LE: loop exit
PB: predicated region body
PF: predicated region fallthrough
CT: control target
= control target key end

     0   :  { %10 = vsyncpa [#allocation3], 0  ;;  %s2686_s0 = inlined_call_operand.hbm [shape: f32[32,32], index: 0, kind: input, shape index: {}]   ;;  %s2687_s1 = inlined_call_operand.hbm [shape: f32[32,96], index: 1, kind: input, shape index: {}]   ;;  %s2688_s2 = inlined_call_operand.hbm [shape: f32[32,32], index: 2, kind: input, shape index: {}]   ;;  %s2689_s3 = inlined_call_operand.vmem [shape: f32[8,96], index: 3, kind: input, shape index: {}]   ;;  %s2690_s4 = inlined_call_operand.hbm [shape: f32[128,128], index: 4, kind: input, shape index: {}]   ;;  %s2691_s5 = inlined_call_operand.hbm [shape: f32[32,32], index: 5, kind: output, shape index: {}]  }
   0x1   :  { %11 = vsyncpa [#allocation6], 0 }
   0x2   :  { %12 = vsyncpa [#allocation9], 0 }
   0x3   :  { %13 = vsyncpa [#allocation4], 0  ;;  %s2216_s18 = smov [#allocation5]   ;;  %s2217_s20 = smov [#allocation2]  }
   0x4   :  { %s31_s19 = sshll.u32 %s2216_s18, 4  ;;  %s19_s21 = sshll.u32 %s2217_s20, 4  ;;  %s32_s19 = int_to_ptr.vmem [resolvable:$true] %s31_s19  ;;  %s2258_s21 = int_to_ptr.vmem [resolvable:$true] %s19_s21 }
   0x5   :  { %s2098_s24 = scalar_lea.hbm %s2687_s1, 512 }
   0x6   :  { %p2099_p0 = scmp.ne.s32.totalorder %s2687_s1, %s2098_s24  ;;  %p2102_p1 = scmp.lt.u32.totalorder %s2098_s24, %s2687_s1 }
   0x8   :  { %p2104_p2 = pnand %p2102_p1, %p2099_p0 }
   0xa   :  { %2107 = shalt.err (!%p2104_p2)
}
   0xb   :  { %s2108_s29 = scalar_lea.vmem %s32_s19, 512  ;;  %p2113_p4 = scmp.lt.s32.totalorder %s32_s19, %s32_s19 }
   0xc   :  { %p2109_p3 = scmp.ne.s32.totalorder %s32_s19, %s2108_s29  ;;  %p2114_p5 = scmp.lt.s32.totalorder %s2108_s29, %s2108_s29 }
   0xe   :  { %p2115_p6 = por %p2114_p5, %p2113_p4 }
  0x10   :  { %p2116_p7 = pnand %p2115_p6, %p2109_p3 }
  0x12   :  { %2119 = shalt.err (!%p2116_p7)
}
  0x13   :  { %s2218_s30 = smov 128   ;;  %s2219_s6 = smov 8  }
  0x14   :  { %37 = dma.hbm_to_vmem [thread:$0]  %s2687_s1, 512, %s32_s19, [#allocation6], %s2218_s30, %s2218_s30, %s2219_s6  }
  0x15   :  { %s2120_s11 = scalar_lea.hbm %s2686_s0, 512 }
  0x16   :  { %p2121_p8 = scmp.ne.s32.totalorder %s2686_s0, %s2120_s11  ;;  %p2124_p9 = scmp.lt.u32.totalorder %s2120_s11, %s2686_s0 }
  0x18   :  { %p2126_p10 = pnand %p2124_p9, %p2121_p8 }
  0x1a   :  { %2129 = shalt.err (!%p2126_p10)
}
  0x1b   :  { %s2130_s16 = scalar_lea.vmem %s2258_s21, 512  ;;  %p2135_p12 = scmp.lt.s32.totalorder %s2258_s21, %s2258_s21 }
  0x1c   :  { %p2131_p11 = scmp.ne.s32.totalorder %s2258_s21, %s2130_s16  ;;  %p2136_p13 = scmp.lt.s32.totalorder %s2130_s16, %s2130_s16 }
  0x1e   :  { %p2137_p0 = por %p2136_p13, %p2135_p12 }
  0x20   :  { %p2138_p1 = pnand %p2137_p0, %p2131_p11 }
  0x22   :  { %2141 = shalt.err (!%p2138_p1)
}
  0x23   :  { %25 = dma.hbm_to_vmem [thread:$0]  %s2686_s0, 512, %s2258_s21, [#allocation3], %s2218_s30, %s2218_s30, %s2219_s6  }
  0x24   :  { %s2220_s18 = smov [#allocation7]   ;;  %s2221_s20 = smov [#allocation8]  }
  0x25   :  { %s43_s19 = sshll.u32 %s2220_s18, 4  ;;  %s57_s22 = sshll.u32 %s2221_s20, 4  ;;  %s44_s19 = int_to_ptr.vmem [resolvable:$true] %s43_s19  ;;  %s2295_s22 = int_to_ptr.vmem [resolvable:$true] %s57_s22 }
  0x26   :  { %s2142_s25 = scalar_lea.hbm %s2688_s2, 512 }
  0x27   :  { %p2143_p2 = scmp.ne.s32.totalorder %s2688_s2, %s2142_s25  ;;  %p2146_p3 = scmp.lt.u32.totalorder %s2142_s25, %s2688_s2 }
  0x29   :  { %p2148_p4 = pnand %p2146_p3, %p2143_p2 }
  0x2b   :  { %2151 = shalt.err (!%p2148_p4)
}
  0x2c   :  { %s2152_s0 = scalar_lea.vmem %s44_s19, 512  ;;  %p2157_p6 = scmp.lt.s32.totalorder %s44_s19, %s44_s19 }
  0x2d   :  { %p2153_p5 = scmp.ne.s32.totalorder %s44_s19, %s2152_s0  ;;  %p2158_p7 = scmp.lt.s32.totalorder %s2152_s0, %s2152_s0 }
  0x2f   :  { %p2159_p8 = por %p2158_p7, %p2157_p6 }
  0x31   :  { %p2160_p9 = pnand %p2159_p8, %p2153_p5 }
  0x33   :  { %2163 = shalt.err (!%p2160_p9)
}
  0x34   :  { %49 = dma.hbm_to_vmem [thread:$0]  %s2688_s2, 512, %s44_s19, [#allocation6], %s2218_s30, %s2218_s30, %s2219_s6  }
  0x35   :  { %s2164_s10 = scalar_lea.hbm %s2690_s4, 2048 }
  0x36   :  { %p2165_p10 = scmp.ne.s32.totalorder %s2690_s4, %s2164_s10  ;;  %p2168_p11 = scmp.lt.u32.totalorder %s2164_s10, %s2690_s4 }
  0x38   :  { %p2170_p12 = pnand %p2168_p11, %p2165_p10 }
  0x3a   :  { %2173 = shalt.err (!%p2170_p12)
}
  0x3b   :  { %s2174_s15 = scalar_lea.vmem %s2295_s22, 2048  ;;  %p2179_p0 = scmp.lt.s32.totalorder %s2295_s22, %s2295_s22 }
  0x3c   :  { %p2175_p13 = scmp.ne.s32.totalorder %s2295_s22, %s2174_s15  ;;  %p2180_p1 = scmp.lt.s32.totalorder %s2174_s15, %s2174_s15 }
  0x3e   :  { %p2181_p2 = por %p2180_p1, %p2179_p0 }
  0x40   :  { %p2182_p3 = pnand %p2181_p2, %p2175_p13 }
  0x42   :  { %2185 = shalt.err (!%p2182_p3)
}
  0x43   :  { %63 = dma.hbm_to_vmem [thread:$0]  %s2690_s4, 2048, %s2295_s22, [#allocation9], %s2218_s30, %s2218_s30, %s2219_s6  }
  0x44   :  { %2208 = dma.done.wait [#allocation3], 512  }
  0x45   :  { %2209 = vsyncadd [#allocation3], 4294966784 }
  0x46   :  { %2210 = dma.done.wait [#allocation6], 1024  }
  0x47   :  { %2211 = vsyncadd [#allocation6], 4294966272 }
  0x48   :  { %2212 = dma.done.wait [#allocation9], 2048  }
  0x49   :  { %2213 = vsyncadd [#allocation9], 4294965248  ;;  %vm80_vm0 = vcmask 261120   ;;  %v76_v0 = vld [vmem:[#allocation2] sm:$0xff]  ;;  %v78_v1 = vld [vmem:[#allocation2 + $0x10] sm:$0xff]  ;;  %vm300_vm1 = vcmask 64512  }
  0x4a   :  { %v77_v2 = vld [vmem:[#allocation2 + $0x8] sm:$0xff]  ;;  %v81_v3 = vsel %vm80_vm0, %v76_v0, 0.0  ;;  %v87_v4 = vsel %vm80_vm0, %v78_v1, 0.0  ;;  %v79_v5 = vld [vmem:[#allocation2 + $0x18] sm:$0xff]  ;;  %v134_v28 = vld [vmem:[#allocation5] sm:$0xff]  ;;  %s2222_s17 = smov 104  }
  0x4b   :  { %82 = vadd.xlane.f32.xlu0 %v81_v3  ;;  %88 = vadd.xlane.f32.xlu1 %v87_v4  ;;  %v84_v6 = vsel %vm80_vm0, %v77_v2, 0.0  ;;  %v90_v7 = vsel %vm80_vm0, %v79_v5, 0.0  ;;  %v135_v29 = vld [vmem:[#allocation5 + $0x8] sm:$0xff]  ;;  %v136_v31 = vld [vmem:[#allocation5 + $0x10] sm:$0xff]  ;;  %v137_v32 = vld [vmem:[#allocation5 + $0x18] sm:$0xff]  ;;  %s2223_s18 = smov 80  }
  0x4c   :  { %v1816_v30 = vpack.c.bf16 %v135_v29, %v134_v28  ;;  %v1820_v33 = vpack.c.bf16 %v137_v32, %v136_v31  ;;  %v1485_v54 = vld [vmem:[%s2689_s3] ss:$0 sm:$0xff]  ;;  %s2224_s19 = smov 56   ;;  %s2225_s20 = smov 120   ;;  %vm2414_vm2 = vmpackc.low %vm300_vm1, %vm300_vm1 }
  0x4d   :  { %s2226_s22 = smov 112   ;;  %s2227_s27 = smov [#allocation10]  }
  0x4e   :  { %1817 = vmatprep.subr.bf16.mxu1 %v1816_v30  ;;  %s1471_s28 = sshll.u32 %s2227_s27, 4  ;;  %s1472_s28 = int_to_ptr.vmem [resolvable:$true] %s1471_s28 }
  0x4f   :  { %85 = vadd.xlane.f32.xlu0 %v84_v6  ;;  %91 = vadd.xlane.f32.xlu1 %v90_v7  ;;  %p2191_p5 = scmp.lt.s32.totalorder %s1472_s28, %s1472_s28 }
  0x50   :  { %1819 = vmatpush3.bf16.msra.mxu1 %v1816_v30 }
  0x51   :  { %1821 = vmatprep.subr.bf16.mxu1 %v1820_v33 }
  0x54   :  { %1823 = vmatpush3.bf16.msra.mxu1 %v1820_v33 }
  0xd8   :  { %v83_v8 = vpop.xlane.xlu0 %82  ;;  %v89_v9 = vpop.xlane.xlu1 %88 }
  0xd9   :  { %v94_v10 = vmul.f32 0.03125, %v83_v8  ;;  %v96_v11 = vmul.f32 0.03125, %v89_v9 }
  0xdb   :  { %v98_v12 = vsub.f32 %v76_v0, %v94_v10  ;;  %v100_v13 = vsub.f32 %v78_v1, %v96_v11 }
  0xdc   :  { %v86_v14 = vpop.xlane.xlu0 %85  ;;  %v92_v15 = vpop.xlane.xlu1 %91 }
  0xdd   :  { %v95_v16 = vmul.f32 0.03125, %v86_v14  ;;  %v97_v17 = vmul.f32 0.03125, %v92_v15  ;;  %v102_v18 = vmul.f32 %v98_v12, %v98_v12  ;;  %v104_v19 = vmul.f32 %v100_v13, %v100_v13 }
  0xdf   :  { %v99_v20 = vsub.f32 %v77_v2, %v95_v16  ;;  %v101_v21 = vsub.f32 %v79_v5, %v97_v17  ;;  %v106_v22 = vsel %vm80_vm0, %v102_v18, 0.0  ;;  %v112_v23 = vsel %vm80_vm0, %v104_v19, 0.0 }
  0xe0   :  { %107 = vadd.xlane.f32.xlu0 %v106_v22 }
  0xe1   :  { %v103_v24 = vmul.f32 %v99_v20, %v99_v20  ;;  %v105_v25 = vmul.f32 %v101_v21, %v101_v21 }
  0xe3   :  { %v109_v26 = vsel %vm80_vm0, %v103_v24, 0.0  ;;  %v115_v27 = vsel %vm80_vm0, %v105_v25, 0.0 }
  0xe4   :  { %113 = vadd.xlane.f32.xlu0 %v112_v23  ;;  %110 = vadd.xlane.f32.xlu1 %v109_v26 }
  0xe8   :  { %116 = vadd.xlane.f32.xlu1 %v115_v27 }
 0x16d   :  { %v108_v34 = vpop.xlane.xlu0 %107 }
 0x16e   :  { %v118_v35 = vmul.f32 0.03125, %v108_v34 }
 0x170   :  { %v122_v36 = vadd.f32 1e-05, %v118_v35 }
 0x171   :  { %v111_v37 = vpop.xlane.xlu1 %110  ;;  %v114_v38 = vpop.xlane.xlu0 %113 }
 0x172   :  { %2020 = vrsqrt.f32 %v122_v36  ;;  %v119_v39 = vmul.f32 0.03125, %v111_v37  ;;  %v120_v40 = vmul.f32 0.03125, %v114_v38 }
 0x174   :  { %v123_v41 = vadd.f32 1e-05, %v119_v39  ;;  %v124_v42 = vadd.f32 1e-05, %v120_v40 }
 0x175   :  { %v117_v43 = vpop.xlane.xlu1 %116 }
 0x176   :  { %2022 = vrsqrt.f32 %v123_v41  ;;  %v121_v44 = vmul.f32 0.03125, %v117_v43 }
 0x177   :  { %2024 = vrsqrt.f32 %v124_v42 }
 0x178   :  { %v125_v45 = vadd.f32 1e-05, %v121_v44 }
 0x17a   :  { %2026 = vrsqrt.f32 %v125_v45 }
 0x17c   :  { %v2021_v46 = vpop.eup %2020 }
 0x17d   :  { %v130_v47 = vmul.f32 %v2021_v46, %v98_v12 }
 0x17f   :  { %1652 = vmatprep.mubr.msk.f32.mxu1 %vm80_vm0, %v130_v47 }
 0x180   :  { %v2023_v48 = vpop.eup %2022 }
 0x181   :  { %v2025_v49 = vpop.eup %2024  ;;  %v131_v50 = vmul.f32 %v2023_v48, %v99_v20 }
 0x182   :  { %v132_v51 = vmul.f32 %v2025_v49, %v100_v13 }
 0x183   :  { %1653 = vmatmul.mubr.msk.f32.vlgmr.msra.gmra.mrb[0].mxu1 %vm80_vm0, %v131_v50 }
 0x184   :  { %v2027_v52 = vpop.eup %2026  ;;  %1655 = vmatprep.mubr.msk.f32.mxu1 %vm80_vm0, %v132_v51 }
 0x185   :  { %v133_v53 = vmul.f32 %v2027_v52, %v101_v21 }
 0x187   :  { %1656 = vmatmul.mubr.msk.f32.gmra.mrb[2].mxu1 %vm80_vm0, %v133_v53 }
 0x256   :  { %v1654_v55 = vpop.f32.mrb[0].mxu1 }
 0x257   :  { %v2347_v56 = vadd.f32 %v1654_v55, %v1485_v54  ;;  %v221_v57 = vpop.f32.mrb[1].mxu1 }
 0x258   :  { %v222_v58 = vadd.f32 %v1485_v54, %v221_v57 }
 0x259   :  { %246 = vrot.lane.b32.xlu1 %v2347_v56, %s2222_s17 }
 0x25a   :  { %244 = vrot.lane.b32.xlu0 %v222_v58, %s2222_s17  ;;  %v1657_v59 = vpop.f32.mrb[2].mxu1  ;;  %1690 = vmatprep.mubr.msk.f32.mxu1 %vm300_vm1, %v222_v58  ;;  %v1940_v63 = vpack.i.bf16 %v2347_v56, %v222_v58 }
 0x25b   :  { %v231_v60 = vpop.f32.mrb[3].mxu1  ;;  %v2354_v62 = vadd.f32 %v1657_v59, %v1485_v54 }
 0x25c   :  { %v2351_v61 = vadd.f32 %v1485_v54, %v231_v60 }
 0x25e   :  { %252 = vrot.lane.b32.xlu0 %v222_v58, %s2223_s18  ;;  %248 = vrot.lane.b32.xlu1 %v2351_v61, %s2222_s17  ;;  %v1945_v0 = vpack.i.bf16 %v2354_v62, %v2351_v61 }
 0x262   :  { %256 = vrot.lane.b32.xlu0 %v2351_v61, %s2223_s18  ;;  %250 = vrot.lane.b32.xlu1 %v2354_v62, %s2222_s17 }
 0x266   :  { %260 = vrot.lane.b32.xlu0 %v222_v58, %s2224_s19  ;;  %254 = vrot.lane.b32.xlu1 %v2347_v56, %s2223_s18 }
 0x26a   :  { %264 = vrot.lane.b32.xlu0 %v2351_v61, %s2224_s19  ;;  %258 = vrot.lane.b32.xlu1 %v2354_v62, %s2223_s18 }
 0x26e   :  { %1941 = vrot.lane.b32.xlu0 %v1940_v63, %s2225_s20  ;;  %262 = vrot.lane.b32.xlu1 %v2347_v56, %s2224_s19 }
 0x272   :  { %266 = vrot.lane.b32.xlu1 %v2354_v62, %s2224_s19 }
 0x276   :  { %1946 = vrot.lane.b32.xlu1 %v1945_v0, %s2225_s20 }
 0x2cb   :  { %v2368_v1 = vpop.permute.xlu1 %246 }
 0x2cc   :  { %v2370_v2 = vpop.permute.xlu0 %244 }
 0x2cd   :  { %v1950_v3 = vpack.i.bf16 %v2368_v1, %v2370_v2 }
 0x2cf   :  { %1951 = vrot.lane.b32.xlu0 %v1950_v3, %s2225_s20 }
 0x2d0   :  { %v2375_v4 = vpop.permute.xlu1 %248  ;;  %v2377_v5 = vpop.permute.xlu0 %252 }
 0x2d4   :  { %v2379_v6 = vpop.permute.xlu1 %250  ;;  %v2381_v7 = vpop.permute.xlu0 %256 }
 0x2d5   :  { %v1955_v8 = vpack.i.bf16 %v2379_v6, %v2375_v4 }
 0x2d7   :  { %1956 = vrot.lane.b32.xlu1 %v1955_v8, %s2225_s20 }
 0x2d8   :  { %v2386_v9 = vpop.permute.xlu1 %254  ;;  %v2388_v10 = vpop.permute.xlu0 %260 }
 0x2d9   :  { %v2392_v11 = vpack.i.bf16 %v2386_v9, %v2377_v5 }
 0x2db   :  { %1961 = vrot.lane.b32.xlu0 %v2392_v11, %s2225_s20 }
 0x2dc   :  { %v2396_v12 = vpop.permute.xlu1 %258  ;;  %v2398_v13 = vpop.permute.xlu0 %264 }
 0x2dd   :  { %v2402_v14 = vpack.i.bf16 %v2396_v12, %v2381_v7 }
 0x2df   :  { %1966 = vrot.lane.b32.xlu1 %v2402_v14, %s2225_s20 }
 0x2e0   :  { %v2406_v15 = vpop.permute.xlu1 %262  ;;  %v1942_v16 = vpop.permute.xlu0 %1941 }
 0x2e1   :  { %v2410_v17 = vpack.i.bf16 %v2406_v15, %v2388_v10  ;;  %v1944_v18 = vunpack.i.h.bf16 %v1942_v16  ;;  %v1943_v19 = vunpack.i.l.bf16 %v1942_v16 }
 0x2e3   :  { %v1824_v21 = vpack.c.bf16 %v1944_v18, %v1943_v19  ;;  %1971 = vrot.lane.b32.xlu0 %v2410_v17, %s2225_s20 }
 0x2e4   :  { %v2420_v22 = vpop.permute.xlu1 %266 }
 0x2e5   :  { %v2424_v23 = vpack.i.bf16 %v2420_v22, %v2398_v13  ;;  %1826 = vmatprep.subr.msk.bf16.mxu1 %vm2414_vm2, %v1824_v21 }
 0x2e6   :  { %1829 = vmatpush3.bf16.xpose.msk.msra.mxu1 %vm2414_vm2, %v1824_v21 }
 0x2e7   :  { %1981 = vrot.lane.b32.xlu0 %v1940_v63, %s2226_s22  ;;  %1976 = vrot.lane.b32.xlu1 %v2424_v23, %s2225_s20 }
 0x2e8   :  { %v1947_v24 = vpop.permute.xlu1 %1946 }
 0x2e9   :  { %v1949_v25 = vunpack.i.h.bf16 %v1947_v24  ;;  %v1948_v26 = vunpack.i.l.bf16 %v1947_v24 }
 0x2eb   :  { %v1830_v27 = vpack.c.bf16 %v1949_v25, %v1948_v26  ;;  %1991 = vrot.lane.b32.xlu0 %v1950_v3, %s2226_s22  ;;  %1986 = vrot.lane.b32.xlu1 %v1945_v0, %s2226_s22  ;;  %v528_v26 = vld [vmem:[#allocation8 + $0x10] sm:$0xff] }
 0x2ed   :  { %1832 = vmatprep.subr.msk.bf16.mxu1 %vm2414_vm2, %v1830_v27 }
 0x2ee   :  { %1835 = vmatpush3.bf16.xpose.msk.msra.mxu1 %vm2414_vm2, %v1830_v27 }
 0x2ef   :  { %1996 = vrot.lane.b32.xlu1 %v1955_v8, %s2226_s22 }
 0x341   :  { %v1952_v28 = vpop.permute.xlu0 %1951 }
 0x342   :  { %v1954_v29 = vunpack.i.h.bf16 %v1952_v28  ;;  %v1953_v30 = vunpack.i.l.bf16 %v1952_v28 }
 0x344   :  { %v1836_v31 = vpack.c.bf16 %v1954_v29, %v1953_v30 }
 0x346   :  { %1838 = vmatprep.subr.msk.bf16.mxu1 %vm2414_vm2, %v1836_v31 }
 0x347   :  { %1841 = vmatpush3.bf16.xpose.msk.msra.mxu1 %vm2414_vm2, %v1836_v31  ;;  %v533_v31 = vld [vmem:[#allocation8 + $0x38] sm:$0xff] }
 0x349   :  { %v1957_v32 = vpop.permute.xlu1 %1956 }
 0x34a   :  { %v1959_v33 = vunpack.i.h.bf16 %v1957_v32  ;;  %v1958_v34 = vunpack.i.l.bf16 %v1957_v32 }
 0x34c   :  { %v1842_v35 = vpack.c.bf16 %v1959_v33, %v1958_v34  ;;  %v530_v34 = vld [vmem:[#allocation8 + $0x20] sm:$0xff] }
 0x34d   :  { %v1962_v36 = vpop.permute.xlu0 %1961 }
 0x34e   :  { %v1964_v37 = vunpack.i.h.bf16 %v1962_v36  ;;  %v1963_v38 = vunpack.i.l.bf16 %v1962_v36  ;;  %1844 = vmatprep.subr.msk.bf16.mxu1 %vm2414_vm2, %v1842_v35 }
 0x34f   :  { %1847 = vmatpush3.bf16.xpose.msk.msra.mxu1 %vm2414_vm2, %v1842_v35 }
 0x350   :  { %v1848_v39 = vpack.c.bf16 %v1964_v37, %v1963_v38 }
 0x351   :  { %v1967_v40 = vpop.permute.xlu1 %1966 }
 0x352   :  { %v1969_v41 = vunpack.i.h.bf16 %v1967_v40  ;;  %v1968_v42 = vunpack.i.l.bf16 %v1967_v40  ;;  %1850 = vmatprep.subr.msk.bf16.mxu1 %vm2414_vm2, %v1848_v39 }
 0x354   :  { %v1854_v44 = vpack.c.bf16 %v1969_v41, %v1968_v42  ;;  %v532_v42 = vld [vmem:[#allocation8 + $0x30] sm:$0xff] }
 0x355   :  { %v1972_v43 = vpop.permute.xlu0 %1971 }
 0x356   :  { %v1974_v45 = vunpack.i.h.bf16 %v1972_v43  ;;  %v1973_v46 = vunpack.i.l.bf16 %v1972_v43 }
 0x357   :  { %1853 = vmatpush3.bf16.xpose.msk.msra.mxu1 %vm2414_vm2, %v1848_v39  ;;  %v535_v39 = vld [vmem:[#allocation8 + $0x48] sm:$0xff] }
 0x358   :  { %1856 = vmatprep.subr.msk.bf16.mxu1 %vm2414_vm2, %v1854_v44  ;;  %v1860_v52 = vpack.c.bf16 %v1974_v45, %v1973_v46 }
 0x359   :  { %v1977_v47 = vpop.permute.xlu1 %1976  ;;  %v1982_v48 = vpop.permute.xlu0 %1981 }
 0x35a   :  { %v1984_v49 = vunpack.i.h.bf16 %v1982_v48  ;;  %v1983_v50 = vunpack.i.l.bf16 %v1982_v48  ;;  %v1979_v63 = vunpack.i.h.bf16 %v1977_v47  ;;  %v1978_v3 = vunpack.i.l.bf16 %v1977_v47  ;;  %v537_v47 = vld [vmem:[#allocation8 + $0x58] sm:$0xff] }
 0x35c   :  { %v1872_v51 = vpack.c.bf16 %v1984_v49, %v1983_v50  ;;  %v1866_v19 = vpack.c.bf16 %v1979_v63, %v1978_v3  ;;  %v534_v50 = vld [vmem:[#allocation8 + $0x40] sm:$0xff] }
 0x35d   :  { %v1987_v53 = vpop.permute.xlu1 %1986  ;;  %v1992_v54 = vpop.permute.xlu0 %1991 }
 0x35e   :  { %v1989_v55 = vunpack.i.h.bf16 %v1987_v53  ;;  %v1988_v57 = vunpack.i.l.bf16 %v1987_v53  ;;  %v1994_v58 = vunpack.i.h.bf16 %v1992_v54  ;;  %v1993_v59 = vunpack.i.l.bf16 %v1992_v54  ;;  %1873 = vmatprep.subr.bf16.mxu0 %v1872_v51 }
 0x35f   :  { %1859 = vmatpush3.bf16.xpose.msk.msra.mxu1 %vm2414_vm2, %v1854_v44  ;;  %1875 = vmatpush3.bf16.msra.mxu0 %v1872_v51 }
 0x360   :  { %v1876_v60 = vpack.c.bf16 %v1989_v55, %v1988_v57  ;;  %1862 = vmatprep.subr.msk.bf16.mxu1 %vm2414_vm2, %v1860_v52  ;;  %v1880_v8 = vpack.c.bf16 %v1994_v58, %v1993_v59  ;;  %v539_v55 = vld [vmem:[#allocation8 + $0x68] sm:$0xff]  ;;  %v536_v59 = vld [vmem:[#allocation8 + $0x50] sm:$0xff] }
 0x361   :  { %v1997_v0 = vpop.permute.xlu1 %1996 }
 0x362   :  { %v1999_v16 = vunpack.i.h.bf16 %v1997_v0  ;;  %v1998_v18 = vunpack.i.l.bf16 %v1997_v0  ;;  %1877 = vmatprep.subr.bf16.mxu0 %v1876_v60 }
 0x363   :  { %1879 = vmatpush3.bf16.msra.mxu0 %v1876_v60 }
 0x364   :  { %1881 = vmatprep.subr.bf16.mxu0 %v1880_v8  ;;  %v1884_v21 = vpack.c.bf16 %v1999_v16, %v1998_v18 }
 0x367   :  { %1865 = vmatpush3.bf16.xpose.msk.msra.mxu1 %vm2414_vm2, %v1860_v52  ;;  %1883 = vmatpush3.bf16.msra.mxu0 %v1880_v8  ;;  %v541_v8 = vld [vmem:[#allocation8 + $0x78] sm:$0xff] }
 0x368   :  { %1868 = vmatprep.subr.msk.bf16.mxu1 %vm2414_vm2, %v1866_v19  ;;  %1885 = vmatprep.subr.bf16.mxu0 %v1884_v21 }
 0x36b   :  { %1887 = vmatpush3.bf16.msra.mxu0 %v1884_v21 }
 0x36f   :  { %1871 = vmatpush3.bf16.xpose.msk.msra.mxu1 %vm2414_vm2, %v1866_v19  ;;  %v538_v19 = vld [vmem:[#allocation8 + $0x60] sm:$0xff] }
 0x376   :  { %1691 = vmatmul.mubr.msk.f32.vlgmr.msra.gmra.mrb[4].mxu1 %vm300_vm1, %v2347_v56 }
 0x377   :  { %1693 = vmatprep.mubr.msk.f32.mxu1 %vm300_vm1, %v2351_v61  ;;  %v527_v61 = vld [vmem:[#allocation8 + $0x8] sm:$0xff] }
 0x37a   :  { %1694 = vmatmul.mubr.msk.f32.gmra.mrb[6].mxu1 %vm300_vm1, %v2354_v62 }
 0x37b   :  { %1696 = vmatprep.mubr.msk.f32.mxu1 %vm300_vm1, %v2370_v2  ;;  %v526_v2 = vld [vmem:[#allocation8] sm:$0xff] }
 0x37e   :  { %1697 = vmatmul.mubr.msk.f32.gmra.mrb[8].mxu1 %vm300_vm1, %v2368_v1 }
 0x37f   :  { %1699 = vmatprep.mubr.msk.f32.mxu1 %vm300_vm1, %v2375_v4 }
 0x382   :  { %1700 = vmatmul.mubr.msk.f32.gmra.mrb[10].mxu1 %vm300_vm1, %v2379_v6 }
 0x383   :  { %1702 = vmatprep.mubr.msk.f32.mxu1 %vm300_vm1, %v2377_v5 }
 0x386   :  { %1703 = vmatmul.mubr.msk.f32.gmra.mrb[12].mxu1 %vm300_vm1, %v2386_v9  ;;  %v529_v9 = vld [vmem:[#allocation8 + $0x18] sm:$0xff] }
 0x387   :  { %1705 = vmatprep.mubr.msk.f32.mxu1 %vm300_vm1, %v2381_v7 }
 0x38a   :  { %1706 = vmatmul.mubr.msk.f32.gmra.mrb[14].mxu1 %vm300_vm1, %v2396_v12 }
 0x38b   :  { %1708 = vmatprep.mubr.msk.f32.mxu1 %vm300_vm1, %v2388_v10 }
 0x38e   :  { %1709 = vmatmul.mubr.msk.f32.gmra.mrb[16].mxu1 %vm300_vm1, %v2406_v15 }
 0x38f   :  { %1711 = vmatprep.mubr.msk.f32.mxu1 %vm300_vm1, %v2398_v13 }
 0x392   :  { %1712 = vmatmul.mubr.msk.f32.gmra.mrb[18].mxu1 %vm300_vm1, %v2420_v22  ;;  %v531_v22 = vld [vmem:[#allocation8 + $0x28] sm:$0xff] }
 0x449   :  { %v1692_v56 = vpop.f32.mrb[4].mxu1 }
 0x44a   :  { %v511_v62 = vmul.f32 0.35355338, %v1692_v56  ;;  %v431_v1 = vpop.f32.mrb[5].mxu1 }
 0x44b   :  { %v510_v4 = vmul.f32 0.35355338, %v431_v1 }
 0x44c   :  { %v2494_v5 = vadd.f32 %v527_v61, %v511_v62  ;;  %v540_v62 = vld [vmem:[#allocation8 + $0x70] sm:$0xff] }
 0x44d   :  { %v1695_v6 = vpop.f32.mrb[6].mxu1  ;;  %v2496_v7 = vadd.f32 %v526_v2, %v510_v4 }
 0x44e   :  { %v513_v10 = vmul.f32 0.35355338, %v1695_v6  ;;  %560 = vmax.xlane.f32.xlu1 %v2494_v5  ;;  %v441_v12 = vpop.f32.mrb[7].mxu1 }
 0x44f   :  { %558 = vmax.xlane.f32.xlu0 %v2496_v7  ;;  %v512_v15 = vmul.f32 0.35355338, %v441_v12 }
 0x450   :  { %v2500_v13 = vadd.f32 %v529_v9, %v513_v10 }
 0x451   :  { %v1698_v20 = vpop.f32.mrb[8].mxu1  ;;  %v2505_v30 = vadd.f32 %v528_v26, %v512_v15 }
 0x452   :  { %v515_v24 = vmul.f32 0.35355338, %v1698_v20  ;;  %v451_v25 = vpop.f32.mrb[9].mxu1 }
 0x453   :  { %564 = vmax.xlane.f32.xlu0 %v2500_v13  ;;  %v514_v28 = vmul.f32 0.35355338, %v451_v25 }
 0x454   :  { %v2503_v27 = vadd.f32 %v531_v22, %v515_v24 }
 0x455   :  { %v1701_v29 = vpop.f32.mrb[10].mxu1  ;;  %v2511_v38 = vadd.f32 %v530_v34, %v514_v28 }
 0x456   :  { %v517_v32 = vmul.f32 0.35355338, %v1701_v29  ;;  %568 = vmax.xlane.f32.xlu1 %v2503_v27  ;;  %v461_v33 = vpop.f32.mrb[11].mxu1 }
 0x457   :  { %562 = vmax.xlane.f32.xlu0 %v2505_v30  ;;  %v516_v36 = vmul.f32 0.35355338, %v461_v33 }
 0x458   :  { %v2509_v35 = vadd.f32 %v533_v31, %v517_v32 }
 0x459   :  { %v1704_v37 = vpop.f32.mrb[12].mxu1  ;;  %v2517_v46 = vadd.f32 %v532_v42, %v516_v36 }
 0x45a   :  { %v519_v40 = vmul.f32 0.35355338, %v1704_v37  ;;  %572 = vmax.xlane.f32.xlu1 %v2509_v35  ;;  %v471_v41 = vpop.f32.mrb[13].mxu1 }
 0x45b   :  { %566 = vmax.xlane.f32.xlu0 %v2511_v38  ;;  %v518_v44 = vmul.f32 0.35355338, %v471_v41 }
 0x45c   :  { %v2515_v43 = vadd.f32 %v535_v39, %v519_v40 }
 0x45d   :  { %v1707_v45 = vpop.f32.mrb[14].mxu1  ;;  %v2523_v54 = vadd.f32 %v534_v50, %v518_v44 }
 0x45e   :  { %v521_v48 = vmul.f32 0.35355338, %v1707_v45  ;;  %576 = vmax.xlane.f32.xlu1 %v2515_v43  ;;  %v481_v49 = vpop.f32.mrb[15].mxu1 }
 0x45f   :  { %570 = vmax.xlane.f32.xlu0 %v2517_v46  ;;  %v520_v52 = vmul.f32 0.35355338, %v481_v49 }
 0x460   :  { %v2521_v51 = vadd.f32 %v537_v47, %v521_v48 }
 0x461   :  { %v1710_v53 = vpop.f32.mrb[16].mxu1  ;;  %v2529_v3 = vadd.f32 %v536_v59, %v520_v52 }
 0x462   :  { %v523_v57 = vmul.f32 0.35355338, %v1710_v53  ;;  %580 = vmax.xlane.f32.xlu1 %v2521_v51  ;;  %v491_v58 = vpop.f32.mrb[17].mxu1 }
 0x463   :  { %574 = vmax.xlane.f32.xlu0 %v2523_v54  ;;  %v522_v63 = vmul.f32 0.35355338, %v491_v58 }
 0x464   :  { %v2527_v60 = vadd.f32 %v539_v55, %v523_v57 }
 0x465   :  { %v1713_v0 = vpop.f32.mrb[18].mxu1  ;;  %v2535_v61 = vadd.f32 %v538_v19, %v522_v63 }
 0x466   :  { %v525_v16 = vmul.f32 0.35355338, %v1713_v0  ;;  %584 = vmax.xlane.f32.xlu1 %v2527_v60  ;;  %v501_v18 = vpop.f32.mrb[19].mxu1 }
 0x467   :  { %578 = vmax.xlane.f32.xlu0 %v2529_v3  ;;  %v524_v56 = vmul.f32 0.35355338, %v501_v18 }
 0x468   :  { %v2533_v21 = vadd.f32 %v541_v8, %v525_v16 }
 0x469   :  { %v2539_v1 = vadd.f32 %v540_v62, %v524_v56 }
 0x46a   :  { %588 = vmax.xlane.f32.xlu1 %v2533_v21 }
 0x46b   :  { %582 = vmax.xlane.f32.xlu0 %v2535_v61 }
 0x46f   :  { %586 = vmax.xlane.f32.xlu0 %v2539_v1 }
 0x47b   :  { %2006 = vrot.lane.b32.xlu1 %v2402_v14, %s2226_s22 }
 0x485   :  { %2001 = vrot.lane.b32.xlu0 %v2392_v11, %s2226_s22 }
 0x4db   :  { %v561_v2 = vpop.xlane.xlu1 %560 }
 0x4dc   :  { %v591_v4 = vsub.f32 %v2494_v5, %v561_v2  ;;  %v559_v6 = vpop.xlane.xlu0 %558 }
 0x4dd   :  { %v590_v9 = vsub.f32 %v2496_v7, %v559_v6 }
 0x4de   :  { %v608_v10 = vmul.f32 1.442695, %v591_v4 }
 0x4df   :  { %v606_v12 = vmul.f32 1.442695, %v590_v9 }
 0x4e0   :  { %2028 = vpow2.f32 %v608_v10  ;;  %v565_v15 = vpop.xlane.xlu0 %564 }
 0x4e1   :  { %2030 = vpow2.f32 %v606_v12  ;;  %v593_v20 = vsub.f32 %v2500_v13, %v565_v15 }
 0x4e3   :  { %v612_v22 = vmul.f32 1.442695, %v593_v20  ;;  %v569_v24 = vpop.xlane.xlu1 %568 }
 0x4e4   :  { %v563_v25 = vpop.xlane.xlu0 %562  ;;  %v595_v14 = vsub.f32 %v2503_v27, %v569_v24 }
 0x4e5   :  { %2032 = vpow2.f32 %v612_v22  ;;  %v592_v11 = vsub.f32 %v2505_v30, %v563_v25 }
 0x4e6   :  { %v616_v29 = vmul.f32 1.442695, %v595_v14 }
 0x4e7   :  { %v610_v26 = vmul.f32 1.442695, %v592_v11  ;;  %v573_v5 = vpop.xlane.xlu1 %572 }
 0x4e8   :  { %v567_v28 = vpop.xlane.xlu0 %566  ;;  %v597_v7 = vsub.f32 %v2509_v35, %v573_v5 }
 0x4e9   :  { %2034 = vpow2.f32 %v610_v26  ;;  %v594_v63 = vsub.f32 %v2511_v38, %v567_v28 }
 0x4ea   :  { %v2552_v31 = vpop.eup %2028  ;;  %2036 = vpow2.f32 %v616_v29  ;;  %v620_v27 = vmul.f32 1.442695, %v597_v7 }
 0x4eb   :  { %v2554_v32 = vpop.eup %2030  ;;  %v2556_v13 = vpop.xlane.xlu1 %576  ;;  %640 = vadd.xlane.f32.xlu0 %v2552_v31  ;;  %v614_v0 = vmul.f32 1.442695, %v594_v63 }
 0x4ec   :  { %v571_v33 = vpop.xlane.xlu0 %570  ;;  %638 = vadd.xlane.f32.xlu1 %v2554_v32  ;;  %2038 = vpow2.f32 %v620_v27 }
 0x4ed   :  { %v596_v30 = vsub.f32 %v2517_v46, %v571_v33 }
 0x4ef   :  { %v2561_v34 = vpop.eup %2032  ;;  %v581_v36 = vpop.xlane.xlu1 %580  ;;  %v618_v35 = vmul.f32 1.442695, %v596_v30 }
 0x4f0   :  { %v575_v37 = vpop.xlane.xlu0 %574  ;;  %644 = vadd.xlane.f32.xlu1 %v2561_v34  ;;  %v601_v16 = vsub.f32 %v2521_v51, %v581_v36  ;;  %v599_v51 = vsub.f32 %v2515_v43, %v2556_v13 }
 0x4f1   :  { %2040 = vpow2.f32 %v618_v35  ;;  %v598_v8 = vsub.f32 %v2523_v54, %v575_v37 }
 0x4f2   :  { %2042 = vpow2.f32 %v614_v0  ;;  %v628_v19 = vmul.f32 1.442695, %v601_v16  ;;  %v624_v4 = vmul.f32 1.442695, %v599_v51 }
 0x4f3   :  { %v2564_v39 = vpop.eup %2034  ;;  %v585_v40 = vpop.xlane.xlu1 %584  ;;  %v622_v18 = vmul.f32 1.442695, %v598_v8 }
 0x4f4   :  { %v579_v41 = vpop.xlane.xlu0 %578  ;;  %642 = vadd.xlane.f32.xlu1 %v2564_v39  ;;  %v2567_v42 = vpop.eup %2036  ;;  %v603_v56 = vsub.f32 %v2527_v60, %v585_v40 }
 0x4f5   :  { %2044 = vpow2.f32 %v622_v18 }
 0x4f6   :  { %v2570_v46 = vpop.eup %2038  ;;  %2046 = vpow2.f32 %v628_v19  ;;  %v632_v38 = vmul.f32 1.442695, %v603_v56 }
 0x4f7   :  { %v589_v44 = vpop.xlane.xlu1 %588 }
 0x4f8   :  { %v583_v45 = vpop.xlane.xlu0 %582  ;;  %648 = vadd.xlane.f32.xlu1 %v2567_v42  ;;  %v605_v6 = vsub.f32 %v2533_v21, %v589_v44 }
 0x4fa   :  { %v636_v10 = vmul.f32 1.442695, %v605_v6 }
 0x4fb   :  { %v2007_v48 = vpop.permute.xlu1 %2006  ;;  %v2573_v49 = vpop.eup %2040 }
 0x4fc   :  { %652 = vadd.xlane.f32.xlu1 %v2570_v46  ;;  %v587_v47 = vpop.xlane.xlu0 %586  ;;  %v2009_v52 = vunpack.i.h.bf16 %v2007_v48  ;;  %v2008_v53 = vunpack.i.l.bf16 %v2007_v48  ;;  %v2585_v2 = vpop.eup %2042 }
 0x4fd   :  { %v604_v60 = vsub.f32 %v2539_v1, %v587_v47 }
 0x4fe   :  { %v1892_v59 = vpack.c.bf16 %v2009_v52, %v2008_v53 }
 0x4ff   :  { %v2591_v54 = vpop.eup %2044 }
 0x500   :  { %650 = vadd.xlane.f32.xlu1 %v2573_v49  ;;  %v2002_v50 = vpop.permute.xlu0 %2001  ;;  %v2596_v9 = vpop.eup %2046 }
 0x501   :  { %v2004_v55 = vunpack.i.h.bf16 %v2002_v50  ;;  %v2003_v57 = vunpack.i.l.bf16 %v2002_v50  ;;  %2011 = vrot.lane.b32.xlu0 %v2410_v17, %s2226_s22  ;;  %v600_v17 = vsub.f32 %v2529_v3, %v579_v41 }
 0x503   :  { %v1888_v58 = vpack.c.bf16 %v2004_v55, %v2003_v57  ;;  %v626_v62 = vmul.f32 1.442695, %v600_v17 }
 0x505   :  { %1889 = vmatprep.subr.bf16.mxu0 %v1888_v58  ;;  %2048 = vpow2.f32 %v626_v62 }
 0x506   :  { %1891 = vmatpush3.bf16.msra.mxu0 %v1888_v58  ;;  %2050 = vpow2.f32 %v632_v38 }
 0x507   :  { %1893 = vmatprep.subr.bf16.mxu0 %v1892_v59 }
 0x50a   :  { %1895 = vmatpush3.bf16.msra.mxu0 %v1892_v59 }
 0x50f   :  { %v2599_v43 = vpop.eup %2048 }
 0x510   :  { %v2602_v12 = vpop.eup %2050 }
 0x511   :  { %2016 = vrot.lane.b32.xlu1 %v2424_v23, %s2226_s22  ;;  %v602_v23 = vsub.f32 %v2535_v61, %v583_v45  ;;  %v634_v61 = vmul.f32 1.442695, %v604_v60 }
 0x513   :  { %v630_v3 = vmul.f32 1.442695, %v602_v23 }
 0x515   :  { %2052 = vpow2.f32 %v630_v3 }
 0x516   :  { %2054 = vpow2.f32 %v624_v4 }
 0x517   :  { %2056 = vpow2.f32 %v634_v61 }
 0x518   :  { %2058 = vpow2.f32 %v636_v10  ;;  %v895_v10 = vld [vmem:[#allocation7] sm:$0xff] }
 0x51f   :  { %v2605_v1 = vpop.eup %2052 }
 0x520   :  { %646 = vadd.xlane.f32.xlu0 %v2585_v2  ;;  %v2607_v21 = vpop.eup %2054 }
 0x521   :  { %v2611_v15 = vpop.eup %2056 }
 0x522   :  { %v2613_v20 = vpop.eup %2058 }
 0x524   :  { %654 = vadd.xlane.f32.xlu0 %v2591_v54 }
 0x528   :  { %660 = vadd.xlane.f32.xlu0 %v2596_v9 }
 0x52c   :  { %658 = vadd.xlane.f32.xlu0 %v2599_v43 }
 0x530   :  { %664 = vadd.xlane.f32.xlu0 %v2602_v12 }
 0x534   :  { %662 = vadd.xlane.f32.xlu0 %v2605_v1 }
 0x535   :  { %656 = vadd.xlane.f32.xlu1 %v2607_v21 }
 0x538   :  { %666 = vadd.xlane.f32.xlu0 %v2611_v15 }
 0x539   :  { %668 = vadd.xlane.f32.xlu1 %v2613_v20 }
 0x578   :  { %v641_v22 = vpop.xlane.xlu0 %640 }
 0x579   :  { %v639_v24 = vpop.xlane.xlu1 %638 }
 0x57a   :  { %2060 = vrcp.f32 %v639_v24 }
 0x57b   :  { %2062 = vrcp.f32 %v641_v22 }
 0x57c   :  { %v2012_v25 = vpop.permute.xlu0 %2011 }
 0x57d   :  { %v2014_v14 = vunpack.i.h.bf16 %v2012_v25  ;;  %v2013_v11 = vunpack.i.l.bf16 %v2012_v25  ;;  %v645_v26 = vpop.xlane.xlu1 %644 }
 0x57f   :  { %v1896_v5 = vpack.c.bf16 %v2014_v14, %v2013_v11  ;;  %v2095_v14 = vld [vmem:[#allocation2 + $0x8] sm:$0xff]  ;;  %v2096_v11 = vld [vmem:[#allocation2 + $0x10] sm:$0xff] }
 0x581   :  { %v643_v28 = vpop.xlane.xlu1 %642  ;;  %1897 = vmatprep.subr.bf16.mxu0 %v1896_v5 }
 0x582   :  { %1899 = vmatpush3.bf16.msra.mxu0 %v1896_v5  ;;  %2064 = vrcp.f32 %v643_v28 }
 0x583   :  { %2066 = vrcp.f32 %v645_v26  ;;  %v2097_v26 = vld [vmem:[#allocation2 + $0x18] sm:$0xff] }
 0x584   :  { %v2061_v29 = vpop.eup %2060 }
 0x585   :  { %v649_v7 = vpop.xlane.xlu1 %648  ;;  %v686_v13 = vmul.f32 %v2061_v29, %v2554_v32  ;;  %v2063_v40 = vpop.eup %2062 }
 0x586   :  { %v687_v44 = vmul.f32 %v2063_v40, %v2552_v31  ;;  %2068 = vrcp.f32 %v649_v7 }
 0x587   :  { %1746 = vmatprep.mubr.f32.mxu0 %v686_v13 }
 0x589   :  { %v653_v33 = vpop.xlane.xlu1 %652 }
 0x58c   :  { %v2065_v41 = vpop.eup %2064 }
 0x58d   :  { %v651_v27 = vpop.xlane.xlu1 %650  ;;  %v2067_v45 = vpop.eup %2066  ;;  %v688_v47 = vmul.f32 %v2065_v41, %v2564_v39 }
 0x58e   :  { %v689_v32 = vmul.f32 %v2067_v45, %v2561_v34  ;;  %2070 = vrcp.f32 %v651_v27 }
 0x590   :  { %v2069_v53 = vpop.eup %2068 }
 0x591   :  { %v2017_v30 = vpop.permute.xlu1 %2016  ;;  %v691_v39 = vmul.f32 %v2069_v53, %v2567_v42 }
 0x592   :  { %v2019_v36 = vunpack.i.h.bf16 %v2017_v30  ;;  %v2018_v37 = vunpack.i.l.bf16 %v2017_v30 }
 0x594   :  { %v1900_v35 = vpack.c.bf16 %v2019_v36, %v2018_v37 }
 0x596   :  { %1901 = vmatprep.subr.bf16.mxu0 %v1900_v35 }
 0x597   :  { %1903 = vmatpush3.bf16.msra.mxu0 %v1900_v35 }
 0x598   :  { %v2071_v55 = vpop.eup %2070  ;;  %1770 = vmatprep.subr.mxu0 %v895_v10 }
 0x599   :  { %v692_v34 = vmul.f32 %v2071_v55, %v2573_v49 }
 0x59a   :  { %1747 = vmatmul.mubr.f32.vlgmr.msra.gmra.mrb[0].mxu0 %v687_v44 }
 0x59b   :  { %1749 = vmatprep.mubr.f32.mxu0 %v688_v47  ;;  %1771 = vmatpush3.msra.mxu0 %v895_v10 }
 0x59e   :  { %1750 = vmatmul.mubr.f32.gmra.mrb[2].mxu0 %v689_v32 }
 0x5ad   :  { %v647_v48 = vpop.xlane.xlu0 %646 }
 0x5ae   :  { %2072 = vrcp.f32 %v647_v48 }
 0x5af   :  { %2074 = vrcp.f32 %v653_v33 }
 0x5b1   :  { %v655_v50 = vpop.xlane.xlu0 %654 }
 0x5b2   :  { %2076 = vrcp.f32 %v655_v50 }
 0x5b5   :  { %v661_v52 = vpop.xlane.xlu0 %660 }
 0x5b8   :  { %v2073_v57 = vpop.eup %2072 }
 0x5b9   :  { %v659_v31 = vpop.xlane.xlu0 %658  ;;  %v690_v58 = vmul.f32 %v2073_v57, %v2585_v2  ;;  %v2075_v59 = vpop.eup %2074 }
 0x5ba   :  { %v693_v8 = vmul.f32 %v2075_v59, %v2570_v46  ;;  %2078 = vrcp.f32 %v659_v31 }
 0x5bb   :  { %1752 = vmatprep.mubr.f32.mxu0 %v690_v58 }
 0x5bc   :  { %v2077_v63 = vpop.eup %2076  ;;  %1753 = vmatmul.mubr.f32.gmra.mrb[4].mxu0 %v691_v39 }
 0x5bd   :  { %v665_v0 = vpop.xlane.xlu0 %664  ;;  %1755 = vmatprep.mubr.f32.mxu0 %v692_v34  ;;  %v694_v16 = vmul.f32 %v2077_v63, %v2591_v54 }
 0x5c0   :  { %1756 = vmatmul.mubr.f32.gmra.mrb[6].mxu0 %v693_v8 }
 0x5c1   :  { %v663_v18 = vpop.xlane.xlu0 %662  ;;  %1758 = vmatprep.mubr.f32.mxu0 %v694_v16 }
 0x5c2   :  { %v657_v19 = vpop.xlane.xlu1 %656 }
 0x5c3   :  { %2080 = vrcp.f32 %v657_v19 }
 0x5c4   :  { %2082 = vrcp.f32 %v661_v52  ;;  %v2079_v17 = vpop.eup %2078 }
 0x5c5   :  { %2084 = vrcp.f32 %v663_v18  ;;  %v667_v42 = vpop.xlane.xlu0 %666  ;;  %v696_v2 = vmul.f32 %v2079_v17, %v2599_v43 }
 0x5c6   :  { %2086 = vrcp.f32 %v665_v0  ;;  %v669_v49 = vpop.xlane.xlu1 %668 }
 0x5c7   :  { %2088 = vrcp.f32 %v667_v42 }
 0x5c8   :  { %2090 = vrcp.f32 %v669_v49 }
 0x5cd   :  { %v2081_v56 = vpop.eup %2080 }
 0x5ce   :  { %v695_v62 = vmul.f32 %v2081_v56, %v2607_v21  ;;  %v2083_v46 = vpop.eup %2082  ;;  %v898_v21 = vld [vmem:[#allocation7 + $0x18] sm:$0xff] }
 0x5cf   :  { %v2085_v38 = vpop.eup %2084  ;;  %v697_v23 = vmul.f32 %v2083_v46, %v2596_v9  ;;  %v896_v9 = vld [vmem:[#allocation7 + $0x8] sm:$0xff] }
 0x5d0   :  { %1759 = vmatmul.mubr.f32.gmra.mrb[8].mxu0 %v695_v62  ;;  %v2087_v51 = vpop.eup %2086  ;;  %v698_v54 = vmul.f32 %v2085_v38, %v2605_v1  ;;  %v1904_v43 = vpack.c.bf16 %v896_v9, %v895_v10  ;;  %v897_v1 = vld [vmem:[#allocation7 + $0x10] sm:$0xff] }
 0x5d1   :  { %1761 = vmatprep.mubr.f32.mxu0 %v696_v2  ;;  %v2089_v3 = vpop.eup %2088  ;;  %v699_v60 = vmul.f32 %v2087_v51, %v2602_v12  ;;  %v1908_v25 = vpack.c.bf16 %v898_v21, %v897_v1 }
 0x5d2   :  { %v2091_v4 = vpop.eup %2090  ;;  %v700_v6 = vmul.f32 %v2089_v3, %v2611_v15  ;;  %1905 = vmatprep.subr.bf16.mxu0 %v1904_v43 }
 0x5d3   :  { %v701_v61 = vmul.f32 %v2091_v4, %v2613_v20  ;;  %v2094_v20 = vld [vmem:[#allocation2] sm:$0xff] }
 0x5d4   :  { %1762 = vmatmul.mubr.f32.gmra.mrb[10].mxu0 %v697_v23 }
 0x5d5   :  { %1764 = vmatprep.mubr.f32.mxu0 %v698_v54 }
 0x5d8   :  { %1765 = vmatmul.mubr.f32.gmra.mrb[12].mxu0 %v699_v60 }
 0x5d9   :  { %1767 = vmatprep.mubr.f32.mxu0 %v700_v6 }
 0x5dc   :  { %1768 = vmatmul.mubr.f32.gmra.mrb[14].mxu0 %v701_v61 }
 0x66d   :  { %v1748_v22 = vpop.f32.mrb[0].mxu0 }
 0x66e   :  { %v816_v24 = vpop.f32.mrb[1].mxu0 }
 0x66f   :  { %1772 = vmatprep.mubr.msk.f32.mxu0 %vm300_vm1, %v816_v24 }
 0x670   :  { %1773 = vmatmul.mubr.msk.f32.vlgmr.msra.gmra.mrb[16].mxu0 %vm300_vm1, %v1748_v22 }
 0x671   :  { %v1751_v12 = vpop.f32.mrb[2].mxu0  ;;  %1907 = vmatpush3.bf16.msra.mxu0 %v1904_v43 }
 0x672   :  { %v826_v15 = vpop.f32.mrb[3].mxu0  ;;  %1909 = vmatprep.subr.bf16.mxu0 %v1908_v25 }
 0x673   :  { %1775 = vmatprep.mubr.msk.f32.mxu0 %vm300_vm1, %v826_v15  ;;  %v1543_v15 = vld [vmem:[%s2689_s3 + $0x2] ss:$0 sm:$0xff] }
 0x674   :  { %1776 = vmatmul.mubr.msk.f32.gmra.mrb[18].mxu0 %vm300_vm1, %v1751_v12 }
 0x675   :  { %1911 = vmatpush3.bf16.msra.mxu0 %v1908_v25  ;;  %1786 = vmatprep.mubr.msk.f32.mxu0 %vm80_vm0, %v2094_v20 }
 0x676   :  { %1792 = vmatprep.subr.mxu0 %v896_v9 }
 0x678   :  { %1787 = vmatmul.mubr.msk.f32.vlgmr.msra.gmra.mrb[16].mxu0 %vm80_vm0, %v2095_v14 }
 0x679   :  { %1789 = vmatprep.mubr.msk.f32.mxu0 %vm80_vm0, %v2096_v11  ;;  %1793 = vmatpush3.msra.mxu0 %v896_v9 }
 0x67a   :  { %1800 = vmatprep.subr.mxu0 %v897_v1 }
 0x67c   :  { %1790 = vmatmul.mubr.msk.f32.gmra.mrb[18].mxu0 %vm80_vm0, %v2097_v26 }
 0x68f   :  { %v1754_v5 = vpop.f32.mrb[4].mxu0 }
 0x690   :  { %v836_v28 = vpop.f32.mrb[5].mxu0 }
 0x691   :  { %1794 = vmatprep.mubr.msk.f32.mxu0 %vm300_vm1, %v836_v28 }
 0x692   :  { %1795 = vmatmul.mubr.msk.f32.vlgmr.msra.gmra.mrb[16].mxu0 %vm300_vm1, %v1754_v5 }
 0x693   :  { %v1757_v29 = vpop.f32.mrb[6].mxu0  ;;  %1801 = vmatpush3.msra.mxu0 %v897_v1 }
 0x694   :  { %v846_v7 = vpop.f32.mrb[7].mxu0  ;;  %1808 = vmatprep.subr.mxu0 %v898_v21 }
 0x695   :  { %1797 = vmatprep.mubr.msk.f32.mxu0 %vm300_vm1, %v846_v7 }
 0x696   :  { %1798 = vmatmul.mubr.msk.f32.gmra.mrb[18].mxu0 %vm300_vm1, %v1757_v29 }
 0x6a3   :  { %v1760_v13 = vpop.f32.mrb[8].mxu0 }
 0x6a4   :  { %v856_v33 = vpop.f32.mrb[9].mxu0 }
 0x6a5   :  { %1802 = vmatprep.mubr.msk.f32.mxu0 %vm300_vm1, %v856_v33 }
 0x6a6   :  { %1803 = vmatmul.mubr.msk.f32.vlgmr.msra.gmra.mrb[16].mxu0 %vm300_vm1, %v1760_v13 }
 0x6a7   :  { %1809 = vmatpush3.msra.mxu0 %v898_v21  ;;  %v1763_v27 = vpop.f32.mrb[10].mxu0  ;;  %v1542_v21 = vld [vmem:[%s2689_s3 + $0x1] ss:$0 sm:$0xff]  ;;  %s2186_s3 = scalar_lea.vmem %s1472_s28, 512 }
 0x6a8   :  { %v866_v30 = vpop.f32.mrb[11].mxu0  ;;  %p2187_p4 = scmp.ne.s32.totalorder %s1472_s28, %s2186_s3  ;;  %p2192_p6 = scmp.lt.s32.totalorder %s2186_s3, %s2186_s3 }
 0x6a9   :  { %1805 = vmatprep.mubr.msk.f32.mxu0 %vm300_vm1, %v866_v30 }
 0x6aa   :  { %1806 = vmatmul.mubr.msk.f32.gmra.mrb[18].mxu0 %vm300_vm1, %v1763_v27  ;;  %p2193_p7 = por %p2192_p6, %p2191_p5 }
 0x6ab   :  { %v1766_v36 = vpop.f32.mrb[12].mxu0 }
 0x6ac   :  { %v876_v37 = vpop.f32.mrb[13].mxu0  ;;  %p2194_p8 = pnand %p2193_p7, %p2187_p4 }
 0x6ad   :  { %1810 = vmatprep.mubr.msk.f32.mxu0 %vm300_vm1, %v876_v37 }
 0x6ae   :  { %1811 = vmatmul.mubr.msk.f32.vlgmr.msra.gmra.mrb[16].mxu0 %vm300_vm1, %v1766_v36 }
 0x6af   :  { %v1769_v35 = vpop.f32.mrb[14].mxu0 }
 0x6b0   :  { %v886_v40 = vpop.f32.mrb[15].mxu0 }
 0x6b1   :  { %1813 = vmatprep.mubr.msk.f32.mxu0 %vm300_vm1, %v886_v40 }
 0x6b2   :  { %1814 = vmatmul.mubr.msk.f32.gmra.mrb[18].mxu0 %vm300_vm1, %v1769_v35 }
 0x781   :  { %v1812_v41 = vpop.f32.mrb[16].mxu0 }
 0x782   :  { %v1399_v44 = vsel %vm80_vm0, %v1812_v41, 0.0  ;;  %v1375_v45 = vpop.f32.mrb[17].mxu0 }
 0x783   :  { %v1398_v47 = vsel %vm80_vm0, %v1375_v45, 0.0 }
 0x784   :  { %v1400_v32 = vadd.f32 %v1399_v44, %v1398_v47 }
 0x785   :  { %v1815_v48 = vpop.f32.mrb[18].mxu0 }
 0x786   :  { %v1385_v50 = vpop.f32.mrb[19].mxu0  ;;  %v1403_v55 = vsel %vm80_vm0, %v1815_v48, 0.0 }
 0x787   :  { %v1401_v52 = vsel %vm80_vm0, %v1385_v50, 0.0 }
 0x788   :  { %v1402_v53 = vadd.f32 %v1401_v52, %v1400_v32 }
 0x78a   :  { %v1404_v57 = vadd.f32 %v1403_v55, %v1402_v53 }
 0x78c   :  { %v1405_v31 = vrot.slane %v1404_v57, 4 }
 0x78e   :  { %v1406_v58 = vadd.f32 %v1405_v31, %v1404_v57 }
 0x790   :  { %v1407_v39 = vrot.slane %v1406_v58, 2 }
 0x792   :  { %v1408_v59 = vadd.f32 %v1407_v39, %v1406_v58 }
 0x794   :  { %v1409_v34 = vrot.slane %v1408_v59, 1 }
 0x796   :  { %v1410_v63 = vadd.f32 %v1409_v34, %v1408_v59 }
 0x798   :  { %v1411_v0 = vmul.f32 0.03125, %v1410_v63 }
 0x79a   :  { %v1412_v8 = vsub.f32 %v1375_v45, %v1411_v0  ;;  %v1413_v16 = vsub.f32 %v1812_v41, %v1411_v0  ;;  %v1414_v18 = vsub.f32 %v1385_v50, %v1411_v0  ;;  %v1415_v19 = vsub.f32 %v1815_v48, %v1411_v0 }
 0x79c   :  { %v1416_v42 = vmul.f32 %v1412_v8, %v1412_v8  ;;  %v1417_v49 = vmul.f32 %v1413_v16, %v1413_v16  ;;  %v1418_v17 = vmul.f32 %v1414_v18, %v1414_v18  ;;  %v1419_v56 = vmul.f32 %v1415_v19, %v1415_v19 }
 0x79e   :  { %v1420_v62 = vsel %vm80_vm0, %v1416_v42, 0.0  ;;  %v1421_v46 = vsel %vm80_vm0, %v1417_v49, 0.0  ;;  %v1423_v38 = vsel %vm80_vm0, %v1418_v17, 0.0  ;;  %v1425_v51 = vsel %vm80_vm0, %v1419_v56, 0.0 }
 0x79f   :  { %v1422_v2 = vadd.f32 %v1421_v46, %v1420_v62 }
 0x7a1   :  { %v1424_v23 = vadd.f32 %v1423_v38, %v1422_v2 }
 0x7a3   :  { %v1426_v54 = vadd.f32 %v1425_v51, %v1424_v23 }
 0x7a5   :  { %v1427_v3 = vrot.slane %v1426_v54, 4 }
 0x7a7   :  { %v1428_v60 = vadd.f32 %v1427_v3, %v1426_v54 }
 0x7a9   :  { %v1429_v4 = vrot.slane %v1428_v60, 2 }
 0x7ab   :  { %v1430_v6 = vadd.f32 %v1429_v4, %v1428_v60 }
 0x7ad   :  { %v1431_v61 = vrot.slane %v1430_v6, 1 }
 0x7af   :  { %v1432_v10 = vadd.f32 %v1431_v61, %v1430_v6 }
 0x7b1   :  { %v1433_v9 = vmul.f32 0.03125, %v1432_v10 }
 0x7b3   :  { %v1434_v43 = vadd.f32 1e-05, %v1433_v9 }
 0x7b5   :  { %2092 = vrsqrt.f32 %v1434_v43 }
 0x7bf   :  { %v2093_v1 = vpop.eup %2092 }
 0x7c0   :  { %v1436_v22 = vmul.f32 %v2093_v1, %v1412_v8  ;;  %v1437_v24 = vmul.f32 %v2093_v1, %v1413_v16  ;;  %v1438_v25 = vmul.f32 %v2093_v1, %v1414_v18  ;;  %v1439_v12 = vmul.f32 %v2093_v1, %v1415_v19 }
 0x7c2   :  { %v1445_v20 = vmul.f32 %v1542_v21, %v1436_v22  ;;  %v1446_v14 = vmul.f32 %v1542_v21, %v1437_v24  ;;  %v1447_v11 = vmul.f32 %v1542_v21, %v1438_v25  ;;  %v1448_v26 = vmul.f32 %v1542_v21, %v1439_v12 }
 0x7c4   :  { %v1456_v5 = vadd.f32 %v1543_v15, %v1447_v11  ;;  %v1454_v28 = vadd.f32 %v1543_v15, %v1445_v20  ;;  %v1455_v29 = vadd.f32 %v1543_v15, %v1446_v14  ;;  %v1457_v7 = vadd.f32 %v1543_v15, %v1448_v26 }
 0x7c6   :  { %v1460_v13 = vmax.f32 %v1456_v5, 0.0  ;;  %v1458_v33 = vmax.f32 %v1454_v28, 0.0  ;;  %v1459_v27 = vmax.f32 %v1455_v29, 0.0  ;;  %v1461_v30 = vmax.f32 %v1457_v7, 0.0 }
 0x7c8   :  { %1464 = vst.msk [vmem:[#allocation10 + $0x10] sm:$0xff] %vm80_vm0, %v1460_v13  ;;  %1462 = vst.msk [vmem:[#allocation10] sm:$0xff] %vm80_vm0, %v1458_v33 }
 0x7c9   :  { %1463 = vst.msk [vmem:[#allocation10 + $0x8] sm:$0xff] %vm80_vm0, %v1459_v27  ;;  %1465 = vst.msk [vmem:[#allocation10 + $0x18] sm:$0xff] %vm80_vm0, %v1461_v30 }
 0x7ca   :  { %2197 = shalt.err (!%p2194_p8)
}
 0x7cb   :  { %s2198_s21 = scalar_lea.hbm %s2691_s5, 512 }
 0x7cc   :  { %p2199_p9 = scmp.ne.s32.totalorder %s2691_s5, %s2198_s21  ;;  %p2202_p10 = scmp.lt.u32.totalorder %s2198_s21, %s2691_s5 }
 0x7ce   :  { %p2204_p11 = pnand %p2202_p10, %p2199_p9 }
 0x7d0   :  { %2207 = shalt.err (!%p2204_p11)
}
 0x7d1   :  { %1477 = dma.vmem_to_hbm [thread:$0]  %s1472_s28, 512, %s2691_s5, [#allocation4], %s2218_s30, %s2218_s30, %s2219_s6  }
 0x7d2   :  { %2214 = dma.done.wait [#allocation4], 512  }
 0x7d3   :  { %2215 = vsyncadd [#allocation4], 4294966784 }
 0x7d4   :  { %1481 = vsyncpa [#allocation3], 1 }
 0x7d5   :  { %1482 = vsyncpa [#allocation6], 1 }
 0x7d6   :  { %1483 = vsyncpa [#allocation9], 1 }
 0x7d7   :  { %1484 = vsyncpa [#allocation4], 1 }

</bundles_post_ra>
